<compile_context>
chip_gen: v5e
topology: v5e:2x2
jax: 0.10.0
libtpu: 0.0.40
codegen_flags: <defaults>
</compile_context>

<pallas_src>
import functools

import jax
import jax.numpy as jnp
from jax import lax
from jax.experimental import pallas as pl
from jax.experimental.pallas import tpu as pltpu

EPS = 1e-5   # nn.BatchNorm2d default eps


def calc_rel_pos(n):
    # mirrors the torch helper (torch.meshgrid default indexing='ij')
    ii, jj = jnp.meshgrid(jnp.arange(n), jnp.arange(n), indexing="ij")
    pos = jnp.stack([ii.reshape(-1), jj.reshape(-1)], axis=-1)        # (N, 2)
    rel_pos = pos[None, :, :] - pos[:, None, :]                       # (N, N, 2)
    return rel_pos + (n - 1)


def _round_up(a, m):
    return (a + m - 1) // m * m


def _vmem_limit_bytes(resident_bytes):
    """Shape-derived scoped-VMEM budget, capped below the device capacity."""
    try:
        cap = pltpu.get_tpu_info().vmem_capacity_bytes
    except Exception:
        cap = 64 * 1024 * 1024          # v7x-safe fallback
    want = 3 * resident_bytes + (8 << 20)
    return int(min(max(32 << 20, want), cap * 7 // 8))


def _lambda_kernel(x_ref, w_ref, shift_ref, e_ref, out_ref,
                   *, N, K, H, U, V, G, QP, KP):
    """One grid step = G images; everything in channels-as-rows layout."""
    HKV, UK, UV = H * K * V, U * K, U * V

    w = w_ref[...]                                  # (DP, C)   bf16, BN scale folded
    shift = shift_ref[...]                          # (DP, 1)   f32 BN shift
    e_posT = e_ref[...]                             # (U*N, K*N) bf16

    for g in range(G):                              # static unroll, G is small
        xg = x_ref[g]                               # (C, N) bf16
        # fused q_exp | k | v projection: one MXU call, f32 accumulation,
        # BatchNorm folded in (scale in w, shift added here).
        slab = jnp.dot(w, xg, preferred_element_type=jnp.float32) + shift

        q_exp = slab[:HKV]                          # (HKV, N) BN'd queries, rows (h,k,v)
        k_raw = slab[QP:QP + UK]                    # (UK, N)  keys (not normalized)
        v_n = slab[QP + KP:QP + KP + UV]            # (UV, N)  BN'd values

        # softmax over spatial positions = over the lane axis (lane-dense).
        k_soft = jnp.exp(k_raw - jnp.max(k_raw, axis=1, keepdims=True))
        k_soft = k_soft * pl.reciprocal(
            jnp.sum(k_soft, axis=1, keepdims=True), approx=True)

        # content lambda^T (V, K): sum_u v_u (V,N) . k_u (K,N) over positions.
        lam_uu = lax.dot_general(v_n, k_soft, (((1,), (1,)), ((), ())),
                                 preferred_element_type=jnp.float32)  # (UV, UK)
        lam_cT = lam_uu[:V, :K]
        for u in range(1, U):
            lam_cT = lam_cT + lam_uu[u * V:(u + 1) * V, u * K:(u + 1) * K]

        # position lambda^T: ONE (V, U*N) @ (U*N, K*N) MXU matmul
        # (lane-efficient orientation for V << 128; bf16 in, f32 acc).
        if U == 1:
            v_rT = v_n
        else:
            v_rT = jnp.concatenate(
                [v_n[u * V:(u + 1) * V, :] for u in range(U)], axis=1)
        lam_pT = jnp.dot(v_rT.astype(jnp.bfloat16), e_posT,
                         preferred_element_type=jnp.float32)          # (V, K*N)

        # total lambda^T laid out (K*V, N): row k*V + v (content broadcast over n)
        lam_all = jnp.concatenate(
            [lam_pT[:, k * N:(k + 1) * N] + lam_cT[:, k:k + 1] for k in range(K)],
            axis=0)

        # Y^T[h*V+v, n] = sum_k q_exp[h*K*V + k*V + v, n] * lam_all[k*V + v, n]
        heads_out = []
        for h in range(H):
            prod = q_exp[h * K * V:(h + 1) * K * V] * lam_all          # dense VPU
            acc = prod[0:V]
            for k in range(1, K):
                acc = acc + prod[k * V:(k + 1) * V]
            heads_out.append(acc)                                      # (V, N)
        out_ref[g] = jnp.concatenate(heads_out, axis=0).astype(out_ref.dtype)


def lambda_layer_forward(x, wq_t, wk_t, wv_t, gq, bq, gv, bv, rel_pos_emb,
                         *, heads, dim_k, dim_u, n, images_per_step=None):
    B, C, hh, ww = x.shape
    assert hh == n and ww == n
    N = hh * ww
    H, K, U = heads, dim_k, dim_u
    V = wv_t.shape[1] // U
    HKV, UK, UV, OUT = H * K * V, U * K, U * V, H * V
    QP, KP, VP = _round_up(HKV, 8), _round_up(UK, 8), _round_up(UV, 8)
    DP = QP + KP + VP

    # ---- BatchNorm2d batch statistics (training mode, biased variance) ----
    # Hoisted out of the kernel: computed once, in f32, over the full batch.
    hp = lax.Precision.HIGHEST
    xf = x.reshape(B, C, N).astype(jnp.float32)
    qv_proj = jnp.einsum("bcn,co->bon", xf,
                         jnp.concatenate([wq_t, wv_t], axis=1), precision=hp)
    q_proj, v_proj = qv_proj[:, :H * K], qv_proj[:, H * K:]

    def bn_fold(t, gamma, beta):
        mean = t.mean(axis=(0, 2))
        var = jnp.square(t - mean[None, :, None]).mean(axis=(0, 2))
        scale = gamma.reshape(-1) * lax.rsqrt(var + EPS)
        return scale, beta.reshape(-1) - mean * scale

    sc_q, sh_q = bn_fold(q_proj, gq, bq)
    sc_v, sh_v = bn_fold(v_proj, gv, bv)

    # ---- fused, transposed projection weight with BN scale folded in ----
    # Query rows are expanded per (k, v) so the final combine is a dense
    # per-lane multiply; each segment is padded to a multiple of 8 rows so the
    # in-kernel row slices stay sublane-aligned.
    def pad_rows(a, rows):
        pad = rows - a.shape[0]
        if pad == 0:
            return a
        return jnp.concatenate(
            [a, jnp.zeros((pad,) + a.shape[1:], a.dtype)], axis=0)

    wq_e = jnp.repeat(wq_t.T * sc_q[:, None], V, axis=0)         # (HKV, C)
    sh_q_e = jnp.repeat(sh_q, V)                                 # (HKV,)
    w_fold = jnp.concatenate(
        [pad_rows(wq_e, QP), pad_rows(wk_t.T, KP),
         pad_rows(wv_t.T * sc_v[:, None], VP)], axis=0).astype(jnp.bfloat16)
    shift = jnp.concatenate(
        [pad_rows(sh_q_e, QP), jnp.zeros((KP,), jnp.float32),
         pad_rows(sh_v, VP)], axis=0).reshape(DP, 1).astype(jnp.float32)

    # ---- relative-position embeddings, pre-transposed for lam_p^T ----
    #   e_posT[u*N + m, k*N + nq] = emb[nq, m, k, u]
    rel = calc_rel_pos(n)
    emb = rel_pos_emb[rel[..., 0], rel[..., 1]]                  # (N, N, K, U)
    e_posT = jnp.transpose(emb, (3, 1, 2, 0)).reshape(U * N, K * N)
    e_posT = e_posT.astype(jnp.bfloat16)

    # ---- images per grid step (amortize step overhead at small N) ----
    if images_per_step is None:
        G = max(1, min(B, 512 // max(N, 1)))
        while G > 1 and (B % G != 0 or B // G < 2):
            G -= 1
    else:
        G = images_per_step
    assert B % G == 0, "images_per_step must divide the batch"

    x_in = x.reshape(B, C, N).astype(jnp.bfloat16)

    resident = (2 * (w_fold.size * 2 + shift.size * 4 + e_posT.size * 2)   # consts
                + 2 * G * C * N * 2 + 2 * G * OUT * N * 4                 # x / out blocks
                + (DP + K * V + HKV + OUT) * N * 4)                       # f32 temporaries

    kernel = functools.partial(_lambda_kernel, N=N, K=K, H=H, U=U, V=V,
                               G=G, QP=QP, KP=KP)
    out = pl.pallas_call(
        kernel,
        out_shape=jax.ShapeDtypeStruct((B, OUT, N), jnp.float32),
        grid=(B // G,),
        in_specs=[
            pl.BlockSpec((G, C, N), lambda b: (b, 0, 0)),        # x, this step's images
            pl.BlockSpec((DP, C), lambda b: (0, 0)),             # fused projection (const)
            pl.BlockSpec((DP, 1), lambda b: (0, 0)),             # BN shift (const)
            pl.BlockSpec((U * N, K * N), lambda b: (0, 0)),      # rel-pos, transposed (const)
        ],
        out_specs=pl.BlockSpec((G, OUT, N), lambda b: (b, 0, 0)),
        compiler_params=pltpu.CompilerParams(
            dimension_semantics=("parallel",),                   # megacore on v7x
            vmem_limit_bytes=_vmem_limit_bytes(resident)),
    )(x_in, w_fold, shift, e_posT)

    # (B, H*V, N) is already the module's 'b (h v) hh ww' layout
    return out.reshape(B, OUT, hh, ww)


def reference_forward(x, wq_t, wk_t, wv_t, gq, bq, gv, bv, rel_pos_emb,
                      *, heads, dim_k, dim_u, n):
    """Pure-JAX mirror of the PyTorch forward (global-context branch)."""
    B, C, hh, ww = x.shape
    N = hh * ww
    dim_v = wv_t.shape[1] // dim_u
    hp = jax.lax.Precision.HIGHEST
    xf = x.reshape(B, C, N)
    q = jnp.einsum("bcn,co->bon", xf, wq_t, precision=hp)
    k = jnp.einsum("bcn,co->bon", xf, wk_t, precision=hp)
    v = jnp.einsum("bcn,co->bon", xf, wv_t, precision=hp)

    def bn(t, g, bta):
        mean = t.mean(axis=(0, 2), keepdims=True)
        var = ((t - mean) ** 2).mean(axis=(0, 2), keepdims=True)
        return (t - mean) / jnp.sqrt(var + EPS) * g.reshape(1, -1, 1) + bta.reshape(1, -1, 1)

    q = bn(q, gq, bq)
    v = bn(v, gv, bv)
    q = q.reshape(B, heads, dim_k, N)
    k = k.reshape(B, dim_u, dim_k, N)
    v = v.reshape(B, dim_u, dim_v, N)
    k = jax.nn.softmax(k, axis=-1)
    lam_c = jnp.einsum("bukm,buvm->bkv", k, v, precision=hp)
    Yc = jnp.einsum("bhkn,bkv->bhvn", q, lam_c, precision=hp)
    rel = calc_rel_pos(n)
    emb = rel_pos_emb[rel[..., 0], rel[..., 1]]                       # (N, N, K, U)
    lam_p = jnp.einsum("nmku,buvm->bnkv", emb, v, precision=hp)
    Yp = jnp.einsum("bhkn,bnkv->bhvn", q, lam_p, precision=hp)
    Y = Yc + Yp
    return Y.reshape(B, heads * dim_v, hh, ww)


if __name__ == "__main__":
    # small, module-consistent shapes
    B, dim, n = 2, 16, 8
    heads, dim_k, dim_u = 4, 8, 1
    dim_out = dim
    dim_v = dim_out // heads
    hh = ww = n

    key = jax.random.PRNGKey(0)
    ks = jax.random.split(key, 5)
    x = jax.random.normal(ks[0], (B, dim, hh, ww), jnp.float32)
    # conv weights stored transposed (C_in, C_out); deterministic synthetic init
    wq_t = jax.random.normal(ks[1], (dim, dim_k * heads), jnp.float32) * 0.1
    wk_t = jax.random.normal(ks[2], (dim, dim_k * dim_u), jnp.float32) * 0.1
    wv_t = jax.random.normal(ks[3], (dim, dim_v * dim_u), jnp.float32) * 0.1
    rel_pos_emb = jax.random.normal(
        ks[4], (2 * n - 1, 2 * n - 1, dim_k, dim_u), jnp.float32)
    # BatchNorm affine params at PyTorch init values
    gq = jnp.ones((1, dim_k * heads), jnp.float32)
    bq = jnp.zeros((1, dim_k * heads), jnp.float32)
    gv = jnp.ones((1, dim_v * dim_u), jnp.float32)
    bv = jnp.zeros((1, dim_v * dim_u), jnp.float32)

    out = lambda_layer_forward(x, wq_t, wk_t, wv_t, gq, bq, gv, bv, rel_pos_emb,
                               heads=heads, dim_k=dim_k, dim_u=dim_u, n=n)
    out = jax.block_until_ready(out)
    assert out.shape == (B, heads * dim_v, hh, ww)

    ref = reference_forward(x, wq_t, wk_t, wv_t, gq, bq, gv, bv, rel_pos_emb,
                            heads=heads, dim_k=dim_k, dim_u=dim_u, n=n)
    ref = jax.block_until_ready(ref)
    rel_err = float(jnp.max(jnp.abs(out - ref)) / (jnp.max(jnp.abs(ref)) + 1e-6))
    # bf16 MXU inputs (f32 accumulation) vs. HIGHEST-precision f32 reference
    if rel_err > 3e-2:
        raise AssertionError(f"kernel/reference mismatch, rel_err={rel_err}")
    print("KERNEL_OK")
</pallas_src>

<mosaic_0001>
module attributes {stable_mosaic.version = 11 : i64} {
  func.func @_lambda_kernel(%arg0: i32, %arg1: memref<1x16x64xbf16, #tpu.memory_space<vmem>>, %arg2: memref<144x16xbf16, #tpu.memory_space<vmem>>, %arg3: memref<144x1xf32, #tpu.memory_space<vmem>>, %arg4: memref<64x512xbf16, #tpu.memory_space<vmem>>, %arg5: memref<1x16x64xf32, #tpu.memory_space<vmem>>) attributes {dimension_semantics = [#tpu.dimension_semantics<parallel>], iteration_bounds = array<i64: 2>, scalar_prefetch = 0 : i64, scratch_operands = 0 : i64, tpu.core_type = #tpu.core_type<tc>, window_params = [{transform_indices = @transform_0, window_bounds = array<i64: 1, 16, 64>}, {pipeline_mode = #tpu.pipeline_mode<synchronous>, transform_indices = @transform_1, window_bounds = array<i64: 144, 16>}, {pipeline_mode = #tpu.pipeline_mode<synchronous>, transform_indices = @transform_2, window_bounds = array<i64: 144, 1>}, {pipeline_mode = #tpu.pipeline_mode<synchronous>, transform_indices = @transform_3, window_bounds = array<i64: 64, 512>}, {transform_indices = @transform_4, window_bounds = array<i64: 1, 16, 64>}]} {
    %c0 = arith.constant 0 : index
    %c0_0 = arith.constant 0 : index
    %0 = vector.load %arg2[%c0, %c0_0] : memref<144x16xbf16, #tpu.memory_space<vmem>>, vector<144x16xbf16>
    %c0_1 = arith.constant 0 : index
    %c0_2 = arith.constant 0 : index
    %1 = vector.load %arg3[%c0_1, %c0_2] : memref<144x1xf32, #tpu.memory_space<vmem>>, vector<144x1xf32>
    %c0_3 = arith.constant 0 : index
    %c0_4 = arith.constant 0 : index
    %2 = vector.load %arg4[%c0_3, %c0_4] : memref<64x512xbf16, #tpu.memory_space<vmem>>, vector<64x512xbf16>
    %c0_5 = arith.constant 0 : index
    %c0_6 = arith.constant 0 : index
    %c0_7 = arith.constant 0 : index
    %3 = vector.load %arg1[%c0_5, %c0_6, %c0_7] : memref<1x16x64xbf16, #tpu.memory_space<vmem>>, vector<1x16x64xbf16>
    %4 = vector.shape_cast %3 : vector<1x16x64xbf16> to vector<16x64xbf16>
    %cst = arith.constant dense<0.000000e+00> : vector<144x64xf32>
    %5 = tpu.matmul %0, %4, %cst {dimension_numbers = #tpu.dot_dimension_numbers<[1], [0], [0], [1], [0, 0, 1, 1], [], []>} : vector<144x16xbf16>, vector<16x64xbf16>, vector<144x64xf32> -> vector<144x64xf32>
    %6 = vector.broadcast %1 : vector<144x1xf32> to vector<144x64xf32>
    %7 = arith.addf %5, %6 : vector<144x64xf32>
    %8 = vector.extract_strided_slice %7 {offsets = [0, 0], sizes = [128, 64], strides = [1, 1]} : vector<144x64xf32> to vector<128x64xf32>
    %9 = vector.extract_strided_slice %7 {offsets = [128, 0], sizes = [8, 64], strides = [1, 1]} : vector<144x64xf32> to vector<8x64xf32>
    %10 = vector.extract_strided_slice %7 {offsets = [136, 0], sizes = [4, 64], strides = [1, 1]} : vector<144x64xf32> to vector<4x64xf32>
    %cst_8 = arith.constant dense<0xFF800000> : vector<8xf32>
    %11 = vector.multi_reduction <maximumf>, %9, %cst_8 [1] : vector<8x64xf32> to vector<8xf32>
    %12 = vector.shape_cast %11 : vector<8xf32> to vector<8x1xf32>
    %13 = vector.broadcast %12 : vector<8x1xf32> to vector<8x64xf32>
    %14 = arith.subf %9, %13 : vector<8x64xf32>
    %15 = math.exp %14 : vector<8x64xf32>
    %cst_9 = arith.constant dense<0.000000e+00> : vector<8xf32>
    %16 = vector.multi_reduction <add>, %15, %cst_9 [1] : vector<8x64xf32> to vector<8xf32>
    %17 = vector.shape_cast %16 : vector<8xf32> to vector<8x1xf32>
    %18 = tpu.reciprocal %17 {approx = true} : vector<8x1xf32> -> vector<8x1xf32>
    %19 = vector.broadcast %18 : vector<8x1xf32> to vector<8x64xf32>
    %20 = arith.mulf %15, %19 : vector<8x64xf32>
    %cst_10 = arith.constant dense<0.000000e+00> : vector<4x8xf32>
    %21 = tpu.matmul %10, %20, %cst_10 {dimension_numbers = #tpu.dot_dimension_numbers<[1], [1], [0], [0], [0, 0, 1, 0], [], []>} : vector<4x64xf32>, vector<8x64xf32>, vector<4x8xf32> -> vector<4x8xf32>
    %22 = arith.truncf %10 : vector<4x64xf32> to vector<4x64xbf16>
    %cst_11 = arith.constant dense<0.000000e+00> : vector<4x512xf32>
    %23 = tpu.matmul %22, %2, %cst_11 {dimension_numbers = #tpu.dot_dimension_numbers<[1], [0], [0], [1], [0, 0, 1, 1], [], []>} : vector<4x64xbf16>, vector<64x512xbf16>, vector<4x512xf32> -> vector<4x512xf32>
    %24 = vector.extract_strided_slice %23 {offsets = [0, 0], sizes = [4, 64], strides = [1, 1]} : vector<4x512xf32> to vector<4x64xf32>
    %25 = vector.extract_strided_slice %21 {offsets = [0, 0], sizes = [4, 1], strides = [1, 1]} : vector<4x8xf32> to vector<4x1xf32>
    %26 = vector.broadcast %25 : vector<4x1xf32> to vector<4x64xf32>
    %27 = arith.addf %24, %26 : vector<4x64xf32>
    %28 = vector.extract_strided_slice %23 {offsets = [0, 64], sizes = [4, 64], strides = [1, 1]} : vector<4x512xf32> to vector<4x64xf32>
    %29 = vector.extract_strided_slice %21 {offsets = [0, 1], sizes = [4, 1], strides = [1, 1]} : vector<4x8xf32> to vector<4x1xf32>
    %30 = vector.broadcast %29 : vector<4x1xf32> to vector<4x64xf32>
    %31 = arith.addf %28, %30 : vector<4x64xf32>
    %32 = vector.extract_strided_slice %23 {offsets = [0, 128], sizes = [4, 64], strides = [1, 1]} : vector<4x512xf32> to vector<4x64xf32>
    %33 = vector.extract_strided_slice %21 {offsets = [0, 2], sizes = [4, 1], strides = [1, 1]} : vector<4x8xf32> to vector<4x1xf32>
    %34 = vector.broadcast %33 : vector<4x1xf32> to vector<4x64xf32>
    %35 = arith.addf %32, %34 : vector<4x64xf32>
    %36 = vector.extract_strided_slice %23 {offsets = [0, 192], sizes = [4, 64], strides = [1, 1]} : vector<4x512xf32> to vector<4x64xf32>
    %37 = vector.extract_strided_slice %21 {offsets = [0, 3], sizes = [4, 1], strides = [1, 1]} : vector<4x8xf32> to vector<4x1xf32>
    %38 = vector.broadcast %37 : vector<4x1xf32> to vector<4x64xf32>
    %39 = arith.addf %36, %38 : vector<4x64xf32>
    %40 = vector.extract_strided_slice %23 {offsets = [0, 256], sizes = [4, 64], strides = [1, 1]} : vector<4x512xf32> to vector<4x64xf32>
    %41 = vector.extract_strided_slice %21 {offsets = [0, 4], sizes = [4, 1], strides = [1, 1]} : vector<4x8xf32> to vector<4x1xf32>
    %42 = vector.broadcast %41 : vector<4x1xf32> to vector<4x64xf32>
    %43 = arith.addf %40, %42 : vector<4x64xf32>
    %44 = vector.extract_strided_slice %23 {offsets = [0, 320], sizes = [4, 64], strides = [1, 1]} : vector<4x512xf32> to vector<4x64xf32>
    %45 = vector.extract_strided_slice %21 {offsets = [0, 5], sizes = [4, 1], strides = [1, 1]} : vector<4x8xf32> to vector<4x1xf32>
    %46 = vector.broadcast %45 : vector<4x1xf32> to vector<4x64xf32>
    %47 = arith.addf %44, %46 : vector<4x64xf32>
    %48 = vector.extract_strided_slice %23 {offsets = [0, 384], sizes = [4, 64], strides = [1, 1]} : vector<4x512xf32> to vector<4x64xf32>
    %49 = vector.extract_strided_slice %21 {offsets = [0, 6], sizes = [4, 1], strides = [1, 1]} : vector<4x8xf32> to vector<4x1xf32>
    %50 = vector.broadcast %49 : vector<4x1xf32> to vector<4x64xf32>
    %51 = arith.addf %48, %50 : vector<4x64xf32>
    %52 = vector.extract_strided_slice %23 {offsets = [0, 448], sizes = [4, 64], strides = [1, 1]} : vector<4x512xf32> to vector<4x64xf32>
    %53 = vector.extract_strided_slice %21 {offsets = [0, 7], sizes = [4, 1], strides = [1, 1]} : vector<4x8xf32> to vector<4x1xf32>
    %54 = vector.broadcast %53 : vector<4x1xf32> to vector<4x64xf32>
    %55 = arith.addf %52, %54 : vector<4x64xf32>
    %56 = tpu.concatenate %27, %31, %35, %39, %43, %47, %51, %55 in 0 : vector<4x64xf32>, vector<4x64xf32>, vector<4x64xf32>, vector<4x64xf32>, vector<4x64xf32>, vector<4x64xf32>, vector<4x64xf32>, vector<4x64xf32> -> vector<32x64xf32>
    %57 = vector.extract_strided_slice %8 {offsets = [0, 0], sizes = [32, 64], strides = [1, 1]} : vector<128x64xf32> to vector<32x64xf32>
    %58 = arith.mulf %57, %56 : vector<32x64xf32>
    %59 = vector.extract_strided_slice %58 {offsets = [0, 0], sizes = [4, 64], strides = [1, 1]} : vector<32x64xf32> to vector<4x64xf32>
    %60 = vector.extract_strided_slice %58 {offsets = [4, 0], sizes = [4, 64], strides = [1, 1]} : vector<32x64xf32> to vector<4x64xf32>
    %61 = arith.addf %59, %60 : vector<4x64xf32>
    %62 = vector.extract_strided_slice %58 {offsets = [8, 0], sizes = [4, 64], strides = [1, 1]} : vector<32x64xf32> to vector<4x64xf32>
    %63 = arith.addf %61, %62 : vector<4x64xf32>
    %64 = vector.extract_strided_slice %58 {offsets = [12, 0], sizes = [4, 64], strides = [1, 1]} : vector<32x64xf32> to vector<4x64xf32>
    %65 = arith.addf %63, %64 : vector<4x64xf32>
    %66 = vector.extract_strided_slice %58 {offsets = [16, 0], sizes = [4, 64], strides = [1, 1]} : vector<32x64xf32> to vector<4x64xf32>
    %67 = arith.addf %65, %66 : vector<4x64xf32>
    %68 = vector.extract_strided_slice %58 {offsets = [20, 0], sizes = [4, 64], strides = [1, 1]} : vector<32x64xf32> to vector<4x64xf32>
    %69 = arith.addf %67, %68 : vector<4x64xf32>
    %70 = vector.extract_strided_slice %58 {offsets = [24, 0], sizes = [4, 64], strides = [1, 1]} : vector<32x64xf32> to vector<4x64xf32>
    %71 = arith.addf %69, %70 : vector<4x64xf32>
    %72 = vector.extract_strided_slice %58 {offsets = [28, 0], sizes = [4, 64], strides = [1, 1]} : vector<32x64xf32> to vector<4x64xf32>
    %73 = arith.addf %71, %72 : vector<4x64xf32>
    %74 = vector.extract_strided_slice %8 {offsets = [32, 0], sizes = [32, 64], strides = [1, 1]} : vector<128x64xf32> to vector<32x64xf32>
    %75 = arith.mulf %74, %56 : vector<32x64xf32>
    %76 = vector.extract_strided_slice %75 {offsets = [0, 0], sizes = [4, 64], strides = [1, 1]} : vector<32x64xf32> to vector<4x64xf32>
    %77 = vector.extract_strided_slice %75 {offsets = [4, 0], sizes = [4, 64], strides = [1, 1]} : vector<32x64xf32> to vector<4x64xf32>
    %78 = arith.addf %76, %77 : vector<4x64xf32>
    %79 = vector.extract_strided_slice %75 {offsets = [8, 0], sizes = [4, 64], strides = [1, 1]} : vector<32x64xf32> to vector<4x64xf32>
    %80 = arith.addf %78, %79 : vector<4x64xf32>
    %81 = vector.extract_strided_slice %75 {offsets = [12, 0], sizes = [4, 64], strides = [1, 1]} : vector<32x64xf32> to vector<4x64xf32>
    %82 = arith.addf %80, %81 : vector<4x64xf32>
    %83 = vector.extract_strided_slice %75 {offsets = [16, 0], sizes = [4, 64], strides = [1, 1]} : vector<32x64xf32> to vector<4x64xf32>
    %84 = arith.addf %82, %83 : vector<4x64xf32>
    %85 = vector.extract_strided_slice %75 {offsets = [20, 0], sizes = [4, 64], strides = [1, 1]} : vector<32x64xf32> to vector<4x64xf32>
    %86 = arith.addf %84, %85 : vector<4x64xf32>
    %87 = vector.extract_strided_slice %75 {offsets = [24, 0], sizes = [4, 64], strides = [1, 1]} : vector<32x64xf32> to vector<4x64xf32>
    %88 = arith.addf %86, %87 : vector<4x64xf32>
    %89 = vector.extract_strided_slice %75 {offsets = [28, 0], sizes = [4, 64], strides = [1, 1]} : vector<32x64xf32> to vector<4x64xf32>
    %90 = arith.addf %88, %89 : vector<4x64xf32>
    %91 = vector.extract_strided_slice %8 {offsets = [64, 0], sizes = [32, 64], strides = [1, 1]} : vector<128x64xf32> to vector<32x64xf32>
    %92 = arith.mulf %91, %56 : vector<32x64xf32>
    %93 = vector.extract_strided_slice %92 {offsets = [0, 0], sizes = [4, 64], strides = [1, 1]} : vector<32x64xf32> to vector<4x64xf32>
    %94 = vector.extract_strided_slice %92 {offsets = [4, 0], sizes = [4, 64], strides = [1, 1]} : vector<32x64xf32> to vector<4x64xf32>
    %95 = arith.addf %93, %94 : vector<4x64xf32>
    %96 = vector.extract_strided_slice %92 {offsets = [8, 0], sizes = [4, 64], strides = [1, 1]} : vector<32x64xf32> to vector<4x64xf32>
    %97 = arith.addf %95, %96 : vector<4x64xf32>
    %98 = vector.extract_strided_slice %92 {offsets = [12, 0], sizes = [4, 64], strides = [1, 1]} : vector<32x64xf32> to vector<4x64xf32>
    %99 = arith.addf %97, %98 : vector<4x64xf32>
    %100 = vector.extract_strided_slice %92 {offsets = [16, 0], sizes = [4, 64], strides = [1, 1]} : vector<32x64xf32> to vector<4x64xf32>
    %101 = arith.addf %99, %100 : vector<4x64xf32>
    %102 = vector.extract_strided_slice %92 {offsets = [20, 0], sizes = [4, 64], strides = [1, 1]} : vector<32x64xf32> to vector<4x64xf32>
    %103 = arith.addf %101, %102 : vector<4x64xf32>
    %104 = vector.extract_strided_slice %92 {offsets = [24, 0], sizes = [4, 64], strides = [1, 1]} : vector<32x64xf32> to vector<4x64xf32>
    %105 = arith.addf %103, %104 : vector<4x64xf32>
    %106 = vector.extract_strided_slice %92 {offsets = [28, 0], sizes = [4, 64], strides = [1, 1]} : vector<32x64xf32> to vector<4x64xf32>
    %107 = arith.addf %105, %106 : vector<4x64xf32>
    %108 = vector.extract_strided_slice %8 {offsets = [96, 0], sizes = [32, 64], strides = [1, 1]} : vector<128x64xf32> to vector<32x64xf32>
    %109 = arith.mulf %108, %56 : vector<32x64xf32>
    %110 = vector.extract_strided_slice %109 {offsets = [0, 0], sizes = [4, 64], strides = [1, 1]} : vector<32x64xf32> to vector<4x64xf32>
    %111 = vector.extract_strided_slice %109 {offsets = [4, 0], sizes = [4, 64], strides = [1, 1]} : vector<32x64xf32> to vector<4x64xf32>
    %112 = arith.addf %110, %111 : vector<4x64xf32>
    %113 = vector.extract_strided_slice %109 {offsets = [8, 0], sizes = [4, 64], strides = [1, 1]} : vector<32x64xf32> to vector<4x64xf32>
    %114 = arith.addf %112, %113 : vector<4x64xf32>
    %115 = vector.extract_strided_slice %109 {offsets = [12, 0], sizes = [4, 64], strides = [1, 1]} : vector<32x64xf32> to vector<4x64xf32>
    %116 = arith.addf %114, %115 : vector<4x64xf32>
    %117 = vector.extract_strided_slice %109 {offsets = [16, 0], sizes = [4, 64], strides = [1, 1]} : vector<32x64xf32> to vector<4x64xf32>
    %118 = arith.addf %116, %117 : vector<4x64xf32>
    %119 = vector.extract_strided_slice %109 {offsets = [20, 0], sizes = [4, 64], strides = [1, 1]} : vector<32x64xf32> to vector<4x64xf32>
    %120 = arith.addf %118, %119 : vector<4x64xf32>
    %121 = vector.extract_strided_slice %109 {offsets = [24, 0], sizes = [4, 64], strides = [1, 1]} : vector<32x64xf32> to vector<4x64xf32>
    %122 = arith.addf %120, %121 : vector<4x64xf32>
    %123 = vector.extract_strided_slice %109 {offsets = [28, 0], sizes = [4, 64], strides = [1, 1]} : vector<32x64xf32> to vector<4x64xf32>
    %124 = arith.addf %122, %123 : vector<4x64xf32>
    %125 = tpu.concatenate %73, %90, %107, %124 in 0 : vector<4x64xf32>, vector<4x64xf32>, vector<4x64xf32>, vector<4x64xf32> -> vector<16x64xf32>
    %c0_12 = arith.constant 0 : index
    %c0_13 = arith.constant 0 : index
    %c0_14 = arith.constant 0 : index
    %126 = vector.load %arg5[%c0_12, %c0_13, %c0_14] : memref<1x16x64xf32, #tpu.memory_space<vmem>>, vector<1x16x64xf32>
    %127 = vector.shape_cast %126 : vector<1x16x64xf32> to vector<16x64xf32>
    %128 = vector.shape_cast %125 : vector<16x64xf32> to vector<1x16x64xf32>
    tpu.vector_store %arg5[%c0_12, %c0_13, %c0_14], %128 {strides = array<i32>} : memref<1x16x64xf32, #tpu.memory_space<vmem>>, vector<1x16x64xf32>,
    return
  }
  func.func @transform_0(%arg0: i32) -> (i32, i32, i32) {
    %c0_i32 = arith.constant 0 : i32
    %c0_i32_0 = arith.constant 0 : i32
    %c0_i32_1 = arith.constant 0 : i32
    return %arg0, %c0_i32, %c0_i32_0 : i32, i32, i32
  }
  func.func @transform_1(%arg0: i32) -> (i32, i32) {
    %c0_i32 = arith.constant 0 : i32
    %c0_i32_0 = arith.constant 0 : i32
    %c0_i32_1 = arith.constant 0 : i32
    return %c0_i32, %c0_i32_0 : i32, i32
  }
  func.func @transform_2(%arg0: i32) -> (i32, i32) {
    %c0_i32 = arith.constant 0 : i32
    %c0_i32_0 = arith.constant 0 : i32
    %c0_i32_1 = arith.constant 0 : i32
    return %c0_i32, %c0_i32_0 : i32, i32
  }
  func.func @transform_3(%arg0: i32) -> (i32, i32) {
    %c0_i32 = arith.constant 0 : i32
    %c0_i32_0 = arith.constant 0 : i32
    %c0_i32_1 = arith.constant 0 : i32
    return %c0_i32, %c0_i32_0 : i32, i32
  }
  func.func @transform_4(%arg0: i32) -> (i32, i32, i32) {
    %c0_i32 = arith.constant 0 : i32
    %c0_i32_0 = arith.constant 0 : i32
    %c0_i32_1 = arith.constant 0 : i32
    return %arg0, %c0_i32, %c0_i32_0 : i32, i32, i32
  }
}

</mosaic_0001>

<bundles_post_ra>
// kernel: tpu_custom_call.1
= control target key start
LH: loop header
LB: loop body
LE: loop exit
PB: predicated region body
PF: predicated region fallthrough
CT: control target
= control target key end

     0   :  { %9 = vsyncpa [#allocation3], 0  ;;  %s1577_s0 = inlined_call_operand.vmem [shape: bf16[2,16,64], index: 0, kind: input, shape index: {}]   ;;  %s1578_s1 = inlined_call_operand.vmem [shape: bf16[144,16], index: 1, kind: input, shape index: {}]   ;;  %s1579_s2 = inlined_call_operand.vmem [shape: f32[144,1], index: 2, kind: input, shape index: {}]   ;;  %s1580_s3 = inlined_call_operand.vmem [shape: bf16[64,512], index: 3, kind: input, shape index: {}]   ;;  %s1581_s4 = inlined_call_operand.hbm [shape: f32[2,16,64], index: 4, kind: output, shape index: {}]  }
   0x1   :  { %11 = vsyncpa [#allocation3 + $0x1], 0  ;;  %s1222_s15 = smov 0   ;;  %s1224_s16 = smov 0  }
   0x2   :  { %s1226_s17 = smov 0   ;;  %s1228_s18 = smov 0  }
   0x3 LB: > { %s1243_s19 = sadd.s32 4294967295, %s1184_s18   ;;  %s894_s20 = sadd.s32 4294967294, %s1184_s18   ;;  %s1184_s18 = sphi %s1228_s18, %s1587_s18   ;;  %s1180_s17 = sphi %s1226_s17, %s1586_s17   ;;  %s1176_s16 = sphi %s1224_s16, %s1585_s16   ;;  %s1172_s15 = sphi %s1222_s15, %s1584_s15  }
   0x4   : > { %s1247_s21 = sadd.s32 1, %s1184_s18   ;;  %s113_s22 = sadd.s32 1, %s1180_s17 }
   0x5   : > { %s110_s23 = ssub.s32 %s1184_s18, %s1247_s21  ;;  %p123_p0 = scmp.ne.s32.totalorder %s1180_s17, %s1176_s16 }
   0x6   : > { %p111_p1 = scmp.eq.s32.totalorder %s110_s23, 0  ;;  %p124_p2 = scmp.eq.s32.totalorder %s1243_s19, 1 }
   0x7   : > { %p129_p3 = scmp.ne.s32.totalorder %s1176_s16, %s1172_s15  ;;  %p130_p4 = scmp.eq.s32.totalorder %s894_s20, 1 }
   0x8   : > { %s1258_s24 = scalar_select %p111_p1, %s1180_s17, %s113_s22  }
   0x9   : > { %p1260_p5 = por %p124_p2, %p123_p0  ;;  %p1264_p6 = por %p130_p4, %p129_p3 }
   0xa   : > { %p897_p7 = scmp.ge.s32.totalorder %s1184_s18, 1  ;;  %p165_p8 = scmp.lt.s32.totalorder %s1184_s18, 3 }
   0xc   : > { %p166_p9 = pnand %p897_p7, %p165_p8 }
   0xd   : > { %p191_p10 = scmp.lt.s32.totalorder (!%p166_p9), %s1243_s19, 1  ;;  %s188_s6 = sand.u32 (!%p166_p9), 1, %s1176_s16  }
   0xe   : > { %169 = sbr.rel (%p166_p9) target bundleno = 857 (0x359), region = 36  ;;  %s898_s7 = sshll.u32 (!%p166_p9), %s188_s6, 4 }
   0xf   : > { %s1052_s8 = sshll.u32 (!%p166_p9), %s1243_s19, 4  ;;  %s817_s14 = scalar_lea.sflag (!%p166_p9), [#allocation3], %s188_s6 }
  0x10   : > { %s828_s11 = scalar_lea.hbm (!%p166_p9), %s1581_s4, %s1052_s8 }
  0x11   : > { %s831_s13 = sshll.u32 (!%p166_p9), %s828_s11, 4  ;;  %s832_s13 = int_to_ptr.hbm [resolvable:$true] %s831_s13 }
  0x12   : > { %s1136_s20 = sshra.s32 (!%p166_p9), %s832_s13, 4  ;;  %s1137_s20 = int_to_ptr.hbm [resolvable:$true] %s1136_s20 }
  0x13   : > { %s192_s27 = scalar_select %p191_p10, %s1243_s19, 1  ;;  %v1032_v1 = vld [vmem:[%s1578_s1 + $0x30] sm:$0xff]  ;;  %vm392_vm0 = vcmask 130048   ;;  %v231_v2 = vld [vmem:[%s1579_s2 + $0x80] sm:$0xff]  ;;  %v1186_v3 = vmov 0   ;;  %v1033_v4 = vld [vmem:[%s1578_s1 + $0x38] sm:$0xff] }
  0x14   : > { %1105 = vset.pattern.permute.xlu0 %v1186_v3  ;;  %1106 = vset.pattern.permute.xlu1 %v1186_v3  ;;  %v1034_v5 = vld [vmem:[%s1578_s1 + $0x40] sm:$0xff]  ;;  %vm474_vm1 = vcmask 523264   ;;  %v1027_v15 = vld [vmem:[%s1578_s1 + $0x8] sm:$0xff]  ;;  %v1028_v16 = vld [vmem:[%s1578_s1 + $0x10] sm:$0xff]  ;;  %vm709_vm2 = vcmask 1043456   ;;  %s190_s19 = scalar_lea.vmem [#allocation2], %s898_s7  ;;  %p1143_p0 = scmp.lt.s32.totalorder %s1137_s20, %s1581_s4 }
  0x15   : > { %s1025_s28 = sshll.u32 %s192_s27, 3  ;;  %333 = vperm.xlu0 %1105, %v231_v2   ;;  %1107 = vset.pattern.permute.xlu2 %v1186_v3  ;;  %v1026_v8 = vld [vmem:[%s1578_s1] sm:$0xff]  ;;  %v1029_v17 = vld [vmem:[%s1578_s1 + $0x18] sm:$0xff]  ;;  %v232_v25 = vld [vmem:[%s1579_s2 + $0x88] sm:$0xff]  ;;  %s1194_s27 = smov 64  }
  0x16   : > { %s195_s5 = scalar_lea.vmem %s1577_s0, %s1025_s28  ;;  %v1030_v23 = vld [vmem:[%s1578_s1 + $0x20] sm:$0xff]  ;;  %v220_v26 = vld [vmem:[%s1579_s2 + $0x28] sm:$0xff]  ;;  %v222_v27 = vld [vmem:[%s1579_s2 + $0x38] sm:$0xff]  ;;  %s829_s12 = sshll.u32 %s190_s19, 4  ;;  %s830_s12 = int_to_ptr.vmem [resolvable:$true] %s829_s12 }
  0x17   : > { %v1051_v0 = vld [vmem:[%s195_s5] sm:$0xff]  ;;  %v216_v28 = vld [vmem:[%s1579_s2 + $0x8] sm:$0xff]  ;;  %v217_v29 = vld [vmem:[%s1579_s2 + $0x10] sm:$0xff]  ;;  %s1138_s22 = scalar_lea.hbm %s1137_s20, 16  ;;  %s1142_s28 = scalar_lea.hbm %s1581_s4, 32 }
  0x18   : > { %1054 = vmatpush.bf16.msra.mxu3 %v1051_v0  ;;  %427 = vmatpush.bf16.msra.mxu0 %v1051_v0  ;;  %v215_v24 = vld [vmem:[%s1579_s2] sm:$0xff]  ;;  %v1031_v30 = vld [vmem:[%s1578_s1 + $0x28] sm:$0xff]  ;;  %v218_v31 = vld [vmem:[%s1579_s2 + $0x18] sm:$0xff]  ;;  %p1139_p11 = scmp.ne.s32.totalorder %s1137_s20, %s1138_s22  ;;  %p1144_p1 = scmp.lt.s32.totalorder %s1142_s28, %s1138_s22 }
  0x19   : > { %1053 = vmatpush.bf16.msra.mxu1 %v1051_v0  ;;  %253 = vperm.xlu2 %1107, %v215_v24   ;;  %v1002_v32 = vld [vmem:[%s1580_s3 + $0x60] sm:$0xf]  ;;  %v1049_v33 = vld [vmem:[%s1580_s3 + $0x6c] sm:$0xf0]  ;;  %v1047_v34 = vld [vmem:[%s1580_s3 + $0x64] sm:$0xf] }
  0x1a   : > { %v1003_v35 = vor.u32 %v1049_v33, %v1002_v32  ;;  %v1004_v36 = vld [vmem:[%s1580_s3 + $0x70] sm:$0xf0]  ;;  %v986_v37 = vld [vmem:[%s1580_s3 + $0x40] sm:$0xf]  ;;  %v1045_v38 = vld [vmem:[%s1580_s3 + $0x4c] sm:$0xf0]  ;;  %p1140_p12 = pnand %p1139_p11, %p1260_p5  ;;  %p1145_p2 = por %p1144_p1, %p1143_p0 }
  0x1b   : > { %947 = vmatmul.msk.bf16.vlgmr.msra.gmra.mxu3 %vm392_vm0, %v1032_v1  ;;  %941 = vmatmul.msk.bf16.vlgmr.msra.gmra.mxu0 %vm392_vm0, %v1026_v8  ;;  %v1007_v39 = vor.u32 %v1047_v34, %v1004_v36  ;;  %v1043_v40 = vld [vmem:[%s1580_s3 + $0x44] sm:$0xf]  ;;  %v988_v41 = vld [vmem:[%s1580_s3 + $0x50] sm:$0xf0]  ;;  %v987_v42 = vor.u32 %v1045_v38, %v986_v37  ;;  %v970_v44 = vld [vmem:[%s1580_s3 + $0x20] sm:$0xf] }
  0x1c   : > { %945 = vmatmul.msk.bf16.vlgmr.msra.gmra.mxu1 %vm392_vm0, %v1030_v23  ;;  %600 = vmatpush.bf16.msra.mxu2 %v1003_v35  ;;  %v991_v43 = vor.u32 %v1043_v40, %v988_v41  ;;  %v1041_v45 = vld [vmem:[%s1580_s3 + $0x2c] sm:$0xf0]  ;;  %v219_v46 = vld [vmem:[%s1579_s2 + $0x20] sm:$0xff]  ;;  %v972_v48 = vld [vmem:[%s1580_s3 + $0x30] sm:$0xf0]  ;;  %v1188_v32 = vmov 5   ;;  %p1141_p13 = pneg %p1140_p12 }
  0x1d   : > { %613 = vmatpush.bf16.msrb.mxu3 %v1007_v39  ;;  %v1039_v47 = vld [vmem:[%s1580_s3 + $0x24] sm:$0xf]  ;;  %v971_v49 = vor.u32 %v1041_v45, %v970_v44  ;;  %v221_v51 = vld [vmem:[%s1579_s2 + $0x30] sm:$0xff]  ;;  %v954_v52 = vld [vmem:[%s1580_s3] sm:$0xf]  ;;  %v1189_v33 = vmov 1  }
  0x1e   : > { %v975_v50 = vor.u32 %v1039_v47, %v972_v48  ;;  %v1037_v53 = vld [vmem:[%s1580_s3 + $0xc] sm:$0xf0]  ;;  %v1035_v54 = vld [vmem:[%s1580_s3 + $0x4] sm:$0xf]  ;;  %v956_v56 = vld [vmem:[%s1580_s3 + $0x10] sm:$0xf0]  ;;  %p1146_p3 = pnand %p1145_p2, %p1141_p13 }
  0x1f   : > { %v955_v55 = vor.u32 %v1037_v53, %v954_v52  ;;  %v959_v57 = vor.u32 %v1035_v54, %v956_v56  ;;  %v1048_v58 = vld [vmem:[%s1580_s3 + $0x6c] sm:$0xf]  ;;  %v1012_v59 = vld [vmem:[%s1580_s3 + $0x78] sm:$0xf0]  ;;  %v223_v61 = vld [vmem:[%s1579_s2 + $0x40] sm:$0xff]  ;;  %v1191_v53 = vmov 2  }
  0x20   : > { %601 = vmatpush.bf16.msra.mxu2 %v987_v42  ;;  %v1015_v60 = vor.u32 %v1048_v58, %v1012_v59  ;;  %v1044_v62 = vld [vmem:[%s1580_s3 + $0x4c] sm:$0xf]  ;;  %v996_v63 = vld [vmem:[%s1580_s3 + $0x58] sm:$0xf0]  ;;  %v1050_v8 = vld [vmem:[%s1580_s3 + $0x74] sm:$0xf0] }
  0x21   : > { %258 = vperm.xlu2 %1107, %v216_v28   ;;  %614 = vmatpush.bf16.msrb.mxu3 %v991_v43  ;;  %v999_v1 = vor.u32 %v1044_v62, %v996_v63  ;;  %v1040_v2 = vld [vmem:[%s1580_s3 + $0x2c] sm:$0xf]  ;;  %v962_v24 = vld [vmem:[%s1580_s3 + $0x8] sm:$0xf]  ;;  %v1190_v43 = vmov 7   ;;  %v226_v44 = vld [vmem:[%s1579_s2 + $0x58] sm:$0xff] }
  0x22   : > { %v224_v39 = vld [vmem:[%s1579_s2 + $0x48] sm:$0xff]  ;;  %v225_v48 = vld [vmem:[%s1579_s2 + $0x50] sm:$0xff]  ;;  %v1192_v54 = vmov 4  }
  0x24   : > { %602 = vmatpush.bf16.msra.mxu2 %v971_v49  ;;  %v227_v49 = vld [vmem:[%s1579_s2 + $0x60] sm:$0xff] }
  0x25   : > { %615 = vmatpush.bf16.msrb.mxu3 %v975_v50 }
  0x28   : > { %603 = vmatpush.bf16.msra.mxu2 %v955_v55  ;;  %v1193_v55 = vmov 6  }
  0x29   : > { %263 = vperm.xlu2 %1107, %v217_v29   ;;  %616 = vmatpush.bf16.msrb.mxu3 %v959_v57 }
  0x2b   : > { %948 = vmatmul.msk.bf16.gmra.mxu3 %vm392_vm0, %v1033_v4  ;;  %942 = vmatmul.msk.bf16.gmra.mxu0 %vm392_vm0, %v1027_v15  ;;  %v980_v4 = vld [vmem:[%s1580_s3 + $0x38] sm:$0xf0] }
  0x2c   : > { %946 = vmatmul.msk.bf16.gmra.mxu1 %vm392_vm0, %v1031_v30  ;;  %639 = vmatpush.bf16.msrb.mxu2 %v1015_v60  ;;  %v964_v15 = vld [vmem:[%s1580_s3 + $0x18] sm:$0xf0] }
  0x30   : > { %640 = vmatpush.bf16.msrb.mxu2 %v999_v1 }
  0x31   : > { %268 = vperm.xlu2 %1107, %v218_v31   ;;  %v1187_v31 = vmov 3  }
  0x32   : > { %1109 = vset.pattern.permute.xlu0 %v1187_v31 }
  0x39   : > { %273 = vperm.xlu2 %1107, %v219_v46  }
  0x3b   : > { %949 = vmatmul.msk.bf16.gmra.mxu3 %vm392_vm0, %v1034_v5  ;;  %943 = vmatmul.msk.bf16.gmra.mxu0 %vm392_vm0, %v1028_v16  ;;  %v1010_v5 = vld [vmem:[%s1580_s3 + $0x68] sm:$0xf] }
  0x41   : > { %283 = vperm.xlu2 %1107, %v221_v51   ;;  %v228_v51 = vld [vmem:[%s1579_s2 + $0x68] sm:$0xff] }
  0x49   : > { %293 = vperm.xlu2 %1107, %v223_v61  }
  0x4b   : > { %944 = vmatmul.msk.bf16.gmra.mxu0 %vm392_vm0, %v1029_v17  ;;  %v994_v17 = vld [vmem:[%s1580_s3 + $0x48] sm:$0xf] }
  0x51   : > { %1110 = vset.pattern.permute.xlu2 %v1188_v32 }
  0x87   : > { %v334_v11 = vpop.permute.xlu0 %333 }
  0x99   : > { %v1463_v34 = vpop.f32.mrf.mxu1 }
  0x9e   : > { %v1293_v6 = vpop.f32.mrf.mxu3 }
  0xa1   : > { %v1465_v35 = vpop.f32.mrf.mxu1 }
  0xa6   : > { %v1295_v7 = vpop.f32.mrf.mxu3 }
  0xa9   : > { %v1467_v36 = vpop.f32.mrf.mxu1 }
  0xae   : > { %v1301_v9 = vpop.f32.mrf.mxu3 }
  0xb1   : > { %v1469_v37 = vpop.f32.mrf.mxu1 }
  0xb6   : > { %v1303_v10 = vpop.f32.mrf.mxu3 }
  0xbe   : > { %v469_v12 = vpop.f32.mrf.mxu3 }
  0xbf   : > { %v470_v13 = vadd.f32 %v469_v12, %v334_v11  ;;  %v983_v11 = vor.u32 %v1040_v2, %v980_v4 }
  0xc1   : > { %v475_v14 = vsel %vm474_vm1, %v470_v13, -inf  ;;  %641 = vmatpush.bf16.msrb.mxu2 %v983_v11 }
  0xc2   : > { %476 = vmax.xlane.f32.xlu0 %v475_v14  ;;  %v1036_v14 = vld [vmem:[%s1580_s3 + $0xc] sm:$0xf] }
 0x135   : > { %v477_v18 = vpop.xlane.xlu0 %476 }
 0x136   : > { %v478_v19 = vsub.f32 %v470_v13, %v477_v18  ;;  %v1011_v13 = vor.u32 %v1050_v8, %v1010_v5  ;;  %v1046_v18 = vld [vmem:[%s1580_s3 + $0x54] sm:$0xf0] }
 0x138   : > { %v479_v20 = vmul.f32 1.442695, %v478_v19  ;;  %v967_v19 = vor.u32 %v1036_v14, %v964_v15  ;;  %v229_v14 = vld [vmem:[%s1579_s2 + $0x70] sm:$0xff] }
 0x13a   : > { %1118 = vpow2.f32 %v479_v20  ;;  %642 = vmatpush.bf16.msrb.mxu2 %v967_v19  ;;  %v995_v20 = vor.u32 %v1046_v18, %v994_v17  ;;  %v230_v18 = vld [vmem:[%s1579_s2 + $0x78] sm:$0xff]  ;;  %v429_v19 = vpop.f32.mrf.mxu0 }
 0x140   : > { %v1318_v21 = vpop.eup %1118 }
 0x141   : > { %v481_v22 = vsel %vm474_vm1, %v1318_v21, 0.0 }
 0x142   : > { %482 = vadd.xlane.f32.xlu1 %v481_v22  ;;  %v978_v22 = vld [vmem:[%s1580_s3 + $0x28] sm:$0xf] }
 0x15b   : > { %338 = vperm.xlu1 %1106, %v232_v25   ;;  %v1038_v25 = vld [vmem:[%s1580_s3 + $0x14] sm:$0xf0] }
 0x163   : > { %278 = vperm.xlu1 %1106, %v220_v26   ;;  %v963_v26 = vor.u32 %v1038_v25, %v962_v24 }
 0x16b   : > { %288 = vperm.xlu1 %1106, %v222_v27   ;;  %v471_v27 = vpop.f32.mrf.mxu3 }
 0x173   : > { %1108 = vset.pattern.permute.xlu1 %v1189_v33 }
 0x1b5   : > { %v483_v0 = vpop.xlane.xlu1 %482 }
 0x1b6   : > { %1120 = vrcp.f32 %v483_v0 }
 0x1bc   : > { %v1121_v12 = vpop.eup %1120 }
 0x1bd   : > { %v485_v16 = vmul.f32 %v1121_v12, %v1318_v21  ;;  %v1042_v21 = vld [vmem:[%s1580_s3 + $0x34] sm:$0xf0] }
 0x1be   : > { %v979_v23 = vor.u32 %v1042_v21, %v978_v22 }
 0x1bf   : > { %950 = vmatpush.xpose.msk.msrb.mxu1 %vm474_vm1, %v485_v16 }
 0x1c3   : > { %626 = vmatpush.bf16.msra.mxu1 %v1011_v13 }
 0x1c7   : > { %627 = vmatpush.bf16.msra.mxu1 %v995_v20  ;;  %v431_v20 = vpop.f32.mrf.mxu0 }
 0x1cb   : > { %628 = vmatpush.bf16.msra.mxu1 %v979_v23 }
 0x1cd   : > { %v339_v28 = vpop.permute.xlu1 %338 }
 0x1ce   : > { %v472_v29 = vadd.f32 %v471_v27, %v339_v28 }
 0x1cf   : > { %629 = vmatpush.bf16.msra.mxu1 %v963_v26  ;;  %v434_v22 = vpop.f32.mrf.mxu0 }
 0x1d0   : > { %v512_v30 = vpack.c.bf16 %v472_v29, %v472_v29  ;;  %951 = vmatmul.msk.f32.vlgmr.msrb.gmra.mxu1 %vm474_vm1, %v472_v29 }
 0x1d2   : > { %1016 = vmatmul.msk.bf16.vlgmr.msra.gmra.mxu2 %vm474_vm1, %v512_v30  ;;  %1017 = vmatmul.msk.bf16.vlgmr.msrb.gmra.mxu3 %vm474_vm1, %v512_v30 }
 0x1d5   : > { %v279_v60 = vpop.permute.xlu1 %278 }
 0x1d7   : > { %v1512_v23 = vpop.f32.mrf.mxu0 }
 0x1d8   : > { %1018 = vmatmul.msk.bf16.vlgmr.msra.gmra.mxu1 %vm474_vm1, %v512_v30 }
 0x1dd   : > { %v1500_v62 = vpop.permute.xlu1 %288 }
 0x1df   : > { %v439_v26 = vpop.f32.mrf.mxu0 }
 0x1e2   : > { %1019 = vmatmul.msk.bf16.vlgmr.msrb.gmra.mxu2 %vm474_vm1, %v512_v30 }
 0x1e7   : > { %v441_v29 = vpop.f32.mrf.mxu0 }
 0x24d   : > { %v509_v38 = vpop.f32.mrf.mxu1 }
 0x24e   : > { %675 = vperm.xlu2 %1110, %v509_v38   ;;  %665 = vperm.xlu0 %1109, %v509_v38  }
 0x24f   : > { %655 = vperm.xlu1 %1108, %v509_v38  }
 0x255   : > { %v1474_v40 = vpop.f32.mrf.mxu2  ;;  %v1476_v41 = vpop.f32.mrf.mxu3 }
 0x256   : > { %v1478_v42 = vpop.f32.mrf.mxu1  ;;  %1111 = vset.pattern.permute.xlu2 %v1186_v3  ;;  %1117 = vset.pattern.permute.xlu0 %v1190_v43 }
 0x257   : > { %1112 = vset.pattern.permute.xlu1 %v1190_v43  ;;  %298 = vperm.xlu2 %1111, %v224_v39  }
 0x258   : > { %685 = vperm.xlu1 %1112, %v509_v38  }
 0x25d   : > { %v607_v45 = vpop.f32.mrf.mxu2  ;;  %v620_v46 = vpop.f32.mrf.mxu3 }
 0x25e   : > { %v633_v47 = vpop.f32.mrf.mxu1  ;;  %v442_v45 = vadd.f32 %v441_v29, %v279_v60 }
 0x25f   : > { %308 = vperm.xlu2 %1111, %v226_v44  }
 0x260   : > { %1113 = vset.pattern.permute.xlu1 %v1186_v3  ;;  %v254_v3 = vpop.permute.xlu2 %253 }
 0x261   : > { %303 = vperm.xlu1 %1113, %v225_v48   ;;  %v430_v46 = vadd.f32 %v429_v19, %v254_v3 }
 0x265   : > { %v1491_v50 = vpop.f32.mrf.mxu2 }
 0x267   : > { %313 = vperm.xlu2 %1111, %v227_v49  }
 0x268   : > { %v259_v56 = vpop.permute.xlu2 %258 }
 0x269   : > { %318 = vperm.xlu1 %1113, %v228_v51   ;;  %v432_v47 = vadd.f32 %v431_v20, %v259_v56 }
 0x26d   : > { %v646_v52 = vpop.f32.mrf.mxu2 }
 0x26f   : > { %1114 = vset.pattern.permute.xlu2 %v1191_v53 }
 0x270   : > { %660 = vperm.xlu2 %1114, %v509_v38   ;;  %v1496_v57 = vpop.permute.xlu2 %263 }
 0x271   : > { %650 = vperm.xlu1 %1113, %v509_v38   ;;  %v435_v3 = vadd.f32 %v434_v22, %v1496_v57 }
 0x278   : > { %1115 = vset.pattern.permute.xlu2 %v1192_v54  ;;  %v1498_v58 = vpop.permute.xlu2 %268 }
 0x279   : > { %670 = vperm.xlu2 %1115, %v509_v38  }
 0x280   : > { %v274_v59 = vpop.permute.xlu2 %273 }
 0x281   : > { %1116 = vset.pattern.permute.xlu2 %v1193_v55  ;;  %v440_v49 = vadd.f32 %v439_v26, %v274_v59 }
 0x282   : > { %680 = vperm.xlu2 %1116, %v509_v38   ;;  %v444_v38 = vpop.f32.mrf.mxu0 }
 0x288   : > { %v284_v61 = vpop.permute.xlu2 %283 }
 0x289   : > { %v445_v56 = vadd.f32 %v444_v38, %v284_v61 }
 0x28a   : > { %v446_v20 = vpop.f32.mrf.mxu0 }
 0x28b   : > { %v447_v38 = vadd.f32 %v446_v20, %v1500_v62 }
 0x290   : > { %v294_v63 = vpop.permute.xlu2 %293 }
 0x291   : > { %v450_v51 = vadd.f32 %v1463_v34, %v294_v63 }
 0x2a8   : > { %v676_v8 = vpop.permute.xlu2 %675 }
 0x2a9   : > { %v678_v12 = vadd.f32 %v676_v8, %v1478_v42 }
 0x2ab   : > { %v700_v13 = vrot.slane %v678_v12, 4 }
 0x2b1   : > { %v299_v21 = vpop.permute.xlu2 %298 }
 0x2b9   : > { %v1514_v24 = vpop.permute.xlu2 %308 }
 0x2c0   : > { %v666_v0 = vpop.permute.xlu0 %665 }
 0x2c1   : > { %v668_v1 = vadd.f32 %v666_v0, %v1476_v41  ;;  %v656_v2 = vpop.permute.xlu1 %655  ;;  %v314_v27 = vpop.permute.xlu2 %313 }
 0x2c2   : > { %v658_v4 = vadd.f32 %v656_v2, %v1474_v40  ;;  %v460_v52 = vadd.f32 %v1293_v6, %v314_v27 }
 0x2c3   : > { %v695_v5 = vrot.slane %v668_v1, 4 }
 0x2c4   : > { %v690_v11 = vrot.slane %v658_v4, 4 }
 0x2c5   : > { %696 = vrot.lane.b32.xlu0 %v695_v5, %s1194_s27 }
 0x2c6   : > { %691 = vrot.lane.b32.xlu1 %v690_v11, %s1194_s27 }
 0x2ca   : > { %v686_v15 = vpop.permute.xlu1 %685  ;;  %v661_v30 = vpop.permute.xlu2 %660 }
 0x2cb   : > { %v688_v16 = vadd.f32 %v686_v15, %v1491_v50  ;;  %v663_v32 = vadd.f32 %v661_v30, %v1476_v41  ;;  %v452_v41 = vadd.f32 %v1465_v35, %v299_v21 }
 0x2cd   : > { %701 = vrot.lane.b32.xlu0 %v700_v13, %s1194_s27  ;;  %v705_v17 = vrot.slane %v688_v16, 4 }
 0x2ce   : > { %323 = vperm.xlu1 %1113, %v229_v14  }
 0x2d3   : > { %v304_v25 = vpop.permute.xlu1 %303  ;;  %v671_v48 = vpop.permute.xlu2 %670 }
 0x2d4   : > { %v455_v8 = vadd.f32 %v1467_v36, %v304_v25  ;;  %v673_v35 = vadd.f32 %v671_v48, %v1478_v42 }
 0x2d5   : > { %706 = vrot.lane.b32.xlu0 %v705_v17, %s1194_s27 }
 0x2d6   : > { %328 = vperm.xlu1 %1113, %v230_v18  }
 0x2db   : > { %v319_v28 = vpop.permute.xlu1 %318 }
 0x2dc   : > { %v462_v54 = vadd.f32 %v1295_v7, %v319_v28  ;;  %v681_v42 = vpop.permute.xlu2 %680 }
 0x2e3   : > { %v651_v31 = vpop.permute.xlu1 %650 }
 0x2e4   : > { %v653_v39 = vadd.f32 %v651_v31, %v1474_v40 }
 0x337   : > { %v697_v33 = vpop.permute.xlu0 %696 }
 0x338   : > { %v711_v43 = vsel %vm709_vm2, %v663_v32, %v697_v33  ;;  %v692_v44 = vpop.permute.xlu1 %691 }
 0x339   : > { %v710_v53 = vsel %vm709_vm2, %v653_v39, %v692_v44  ;;  %v715_v55 = vmul.f32 %v711_v43, %v432_v47  ;;  %v738_v40 = vmul.f32 %v711_v43, %v442_v45  ;;  %v761_v59 = vmul.f32 %v711_v43, %v452_v41 }
 0x33a   : > { %v714_v0 = vmul.f32 %v710_v53, %v430_v46  ;;  %v737_v1 = vmul.f32 %v710_v53, %v440_v49  ;;  %v760_v2 = vmul.f32 %v710_v53, %v450_v51  ;;  %v783_v60 = vmul.f32 %v710_v53, %v460_v52 }
 0x33b   : > { %v784_v4 = vmul.f32 %v711_v43, %v462_v54  ;;  %v724_v7 = vrot.slane %v715_v55, 4  ;;  %v747_v11 = vrot.slane %v738_v40, 4  ;;  %v770_v57 = vrot.slane %v761_v59, 4 }
 0x33c   : > { %v719_v34 = vrot.slane %v714_v0, 4  ;;  %v742_v63 = vrot.slane %v737_v1, 4  ;;  %v765_v6 = vrot.slane %v760_v2, 4  ;;  %v788_v5 = vrot.slane %v783_v60, 4 }
 0x33d   : > { %v793_v61 = vrot.slane %v784_v4, 4  ;;  %v437_v43 = vadd.f32 %v1512_v23, %v1498_v58  ;;  %v683_v44 = vadd.f32 %v681_v42, %v1491_v50  ;;  %v457_v47 = vadd.f32 %v1469_v37, %v1514_v24 }
 0x33e   : > { %v721_v13 = vadd.f32 %v719_v34, %v714_v0  ;;  %v744_v14 = vadd.f32 %v742_v63, %v737_v1  ;;  %v767_v15 = vadd.f32 %v765_v6, %v760_v2  ;;  %v790_v16 = vadd.f32 %v788_v5, %v783_v60 }
 0x33f   : > { %v702_v12 = vpop.permute.xlu0 %701 }
 0x340   : > { %v324_v17 = vpop.permute.xlu1 %323  ;;  %v712_v19 = vsel %vm709_vm2, %v673_v35, %v702_v12  ;;  %v722_v22 = vadd.f32 %v721_v13, %v715_v55  ;;  %v745_v21 = vadd.f32 %v744_v14, %v738_v40  ;;  %v768_v36 = vadd.f32 %v767_v15, %v761_v59 }
 0x341   : > { %v465_v18 = vadd.f32 %v1301_v9, %v324_v17  ;;  %v791_v25 = vadd.f32 %v790_v16, %v784_v4  ;;  %v716_v26 = vmul.f32 %v712_v19, %v435_v3  ;;  %v739_v27 = vmul.f32 %v712_v19, %v445_v56 }
 0x342   : > { %v762_v28 = vmul.f32 %v712_v19, %v455_v8  ;;  %v726_v31 = vadd.f32 %v724_v7, %v722_v22  ;;  %v749_v32 = vadd.f32 %v747_v11, %v745_v21  ;;  %v772_v33 = vadd.f32 %v770_v57, %v768_v36 }
 0x343   : > { %v785_v29 = vmul.f32 %v712_v19, %v465_v18  ;;  %v795_v30 = vadd.f32 %v793_v61, %v791_v25  ;;  %v729_v9 = vrot.slane %v716_v26, 4  ;;  %v752_v39 = vrot.slane %v739_v27, 4 }
 0x344   : > { %v727_v45 = vadd.f32 %v726_v31, %v716_v26  ;;  %v750_v46 = vadd.f32 %v749_v32, %v739_v27  ;;  %v773_v48 = vadd.f32 %v772_v33, %v762_v28  ;;  %v775_v49 = vrot.slane %v762_v28, 4 }
 0x345   : > { %v798_v51 = vrot.slane %v785_v29, 4  ;;  %v796_v62 = vadd.f32 %v795_v30, %v785_v29 }
 0x346   : > { %v731_v54 = vadd.f32 %v729_v9, %v727_v45  ;;  %v754_v58 = vadd.f32 %v752_v39, %v750_v46  ;;  %v777_v2 = vadd.f32 %v775_v49, %v773_v48 }
 0x347   : > { %v707_v52 = vpop.permute.xlu0 %706  ;;  %v800_v3 = vadd.f32 %v798_v51, %v796_v62 }
 0x348   : > { %v329_v53 = vpop.permute.xlu1 %328  ;;  %v713_v41 = vsel %vm709_vm2, %v683_v44, %v707_v52 }
 0x349   : > { %v467_v50 = vadd.f32 %v1303_v10, %v329_v53  ;;  %v717_v23 = vmul.f32 %v713_v41, %v437_v43  ;;  %v740_v55 = vmul.f32 %v713_v41, %v447_v38  ;;  %v763_v40 = vmul.f32 %v713_v41, %v457_v47 }
 0x34b   : > { %v732_v0 = vadd.f32 %v731_v54, %v717_v23  ;;  %v734_v37 = vrot.slane %v717_v23, 4  ;;  %v755_v24 = vadd.f32 %v754_v58, %v740_v55  ;;  %v757_v1 = vrot.slane %v740_v55, 4 }
 0x34c   : > { %v786_v60 = vmul.f32 %v713_v41, %v467_v50  ;;  %v778_v10 = vadd.f32 %v777_v2, %v763_v40  ;;  %v780_v4 = vrot.slane %v763_v40, 4 }
 0x34d   : > { %v736_v56 = vadd.f32 %v734_v37, %v732_v0  ;;  %v759_v59 = vadd.f32 %v757_v1, %v755_v24 }
 0x34e   : > { %v801_v34 = vadd.f32 %v800_v3, %v786_v60  ;;  %v803_v63 = vrot.slane %v786_v60, 4  ;;  %v782_v35 = vadd.f32 %v780_v4, %v778_v10 }
 0x34f   : > { %v807_v6 = vrot.slane %v759_v59, 4 }
 0x350   : > { %v805_v5 = vadd.f32 %v803_v63, %v801_v34 }
 0x351   : > { %v812_v8 = vsel %vm709_vm2, %v736_v56, %v807_v6 }
 0x352   : > { %v810_v7 = vrot.slane %v805_v5, 4  ;;  %814 = vst.msk [vmem:[%s190_s19] sm:$0xff] %vm474_vm1, %v812_v8 }
 0x354   : > { %v813_v11 = vsel %vm709_vm2, %v782_v35, %v810_v7 }
 0x355   : > { %815 = vst.msk [vmem:[%s190_s19 + $0x8] sm:$0xff] %vm474_vm1, %v813_v11 }
 0x356   : > { %1149 = shalt.err (!%p1146_p3)
}
 0x357   : > { %s1195_s5 = smov 128   ;;  %s1196_s6 = smov 8  }
 0x358   : > { %1055 = dma.vmem_to_hbm [thread:$0]  (%p1260_p5), %s830_s12, 256, %s832_s13, %s817_s14, %s1195_s5, %s1195_s5, %s1196_s6  }
 0x359 PF: > { %p1061_p4 = scmp.ge.s32.totalorder %s1184_s18, 2  ;;  %s846_s7 = sand.u32 1, %s1172_s15  }
 0x35a   : > { %s847_s8 = scalar_lea.sflag [#allocation3], %s846_s7 }
 0x35b   : > { %p1058_p7 = pnand %p1061_p4, %p1264_p6 }
 0x35d   : > { %p1059_p8 = pneg %p1058_p7 }
 0x35f   : > { %1167 = dma.done.wait (%p1059_p8), %s847_s8, 256  }
 0x360   : > { %1169 = vsyncadd (%p1059_p8), %s847_s8, 4294967040  ;;  %p14_p9 = scmp.ge.s32.totalorder %s1247_s21, 4   ;;  %s1584_s15 = smov %s1176_s16 }
 0x361   : > { %s1585_s16 = smov %s1180_s17  ;;  %s1586_s17 = smov %s1258_s24 }
 0x362   : > { %s1587_s18 = smov %s1247_s21  ;;  %16 = sbr.rel (!%p14_p9) target bundleno = 3 (0x3), region = 71 }
 0x367   :  { %853 = vsyncpa [#allocation3], 1 }
 0x368   :  { %855 = vsyncpa [#allocation3 + $0x1], 1 }

</bundles_post_ra>
